<compile_context>
chip_gen: v6e
topology: v6e:2x2x1
jax: 0.10.0
libtpu: 0.0.40
codegen_flags: <defaults>
</compile_context>

<pallas_src>
import functools
import math

import jax
import jax.numpy as jnp
from jax import lax
from jax.experimental import pallas as pl
from jax.experimental.pallas import tpu as pltpu


_TARGET_TILE = 4 << 20      # ~4 MiB tiles: DMA per step >> 0.35 us step overhead
_VMEM_FLOOR = 16 << 20
_VMEM_CAP = 40 << 20        # stays under v7x's 64 MiB/TC physical VMEM
_MIN_TILE_LIMIT = 4 << 20   # largest *minimal* tile the single-pass path accepts


# ----------------------------- math helpers ---------------------------------

def _pow_p(xf, power):
    """x**p with torch semantics (NaN for negative base & non-integer p)."""
    p = float(power)
    if p == 2.0:
        return xf * xf
    if p == int(p) and p > 0:
        # small integer powers: repeated multiply on the VALU, not exp(p*log x)
        return lax.integer_pow(xf, int(p))
    return jnp.power(xf, p)


def _inv_root(s, power):
    """s ** (-1/p): the reciprocal of the norm (multiply instead of divide)."""
    p = float(power)
    if p == 2.0:
        return lax.rsqrt(s)               # EUP rsqrt, accurate
    if p == 1.0:
        return 1.0 / s
    return jnp.exp(jnp.log(s) * (-1.0 / p))


def _vmem_limit(tile_bytes):
    # in + out double-buffered tiles plus f32 intermediates, with headroom.
    return int(min(max(10 * tile_bytes, _VMEM_FLOOR), _VMEM_CAP))


# ------------------------------- kernels -------------------------------------

def _normalize_kernel(x_ref, o_ref, *, power, axis):
    """One block; reduction over `axis` (lane axis for 2-D, sublane for 3-D)."""
    xf = x_ref[...].astype(jnp.float32)               # accumulate in f32
    s = jnp.sum(_pow_p(xf, power), axis=axis, keepdims=True)
    # scale in f32 and cast once at the store (precision + no bf16 VALU on v5e)
    o_ref[...] = (xf * _inv_root(s, power)).astype(o_ref.dtype)


def _rowsum_kernel(x_ref, s_ref, *, power, c_total, tc):
    """Two-pass path (huge C): accumulate sum(|x|^p) per row across C chunks."""
    j = pl.program_id(1)

    @pl.when(j == 0)
    def _():
        s_ref[...] = jnp.zeros_like(s_ref)

    xf = x_ref[...].astype(jnp.float32)
    # mask lanes beyond the real C (edge block reads are unspecified values)
    lane = lax.broadcasted_iota(jnp.int32, xf.shape, 1) + j * tc
    contrib = jnp.where(lane < c_total, _pow_p(xf, power), 0.0)
    s_ref[...] += jnp.sum(contrib, axis=-1, keepdims=True)


# ------------------------------ dispatchers ----------------------------------

def _normalize_2d(x, power, pack, target_tile_bytes):
    """(N, C): reduce over the last (lane) axis; ragged N via edge blocks."""
    N, C = x.shape
    itemsize = jnp.dtype(x.dtype).itemsize
    lane_c = pl.cdiv(C, 128) * 128                    # VMEM lane padding of C
    row_bytes = lane_c * itemsize

    rows = pl.cdiv(N, pack) * pack
    tm = max(pack, (target_tile_bytes // row_bytes) // pack * pack)
    tm = min(tm, rows)
    # keep >=4 (else >=2) grid steps when rows allow -> both v7x TCs stay busy
    for steps in (4, 2):
        if rows >= steps * pack:
            tm = min(tm, max(pack, (rows // steps) // pack * pack))
            break

    grid = (pl.cdiv(N, tm),)
    tile_bytes = tm * lane_c * itemsize
    kernel = functools.partial(_normalize_kernel, power=power, axis=-1)

    return pl.pallas_call(
        kernel,
        out_shape=jax.ShapeDtypeStruct((N, C), x.dtype),
        grid_spec=pltpu.PrefetchScalarGridSpec(
            num_scalar_prefetch=0,
            grid=grid,
            in_specs=[pl.BlockSpec((tm, C), lambda i: (i, 0))],
            out_specs=pl.BlockSpec((tm, C), lambda i: (i, 0)),
        ),
        compiler_params=pltpu.CompilerParams(
            dimension_semantics=("parallel",),
            vmem_limit_bytes=_vmem_limit(tile_bytes),
        ),
        cost_estimate=pl.CostEstimate(
            flops=4 * N * C,
            transcendentals=N,
            bytes_accessed=2 * N * C * itemsize,
        ),
    )(x)


def _normalize_3d(x3, power, pack, target_tile_bytes):
    """(N, C, L): reduce over the channel (sublane) axis; no transpose."""
    N, C, L = x3.shape
    itemsize = jnp.dtype(x3.dtype).itemsize
    c_sub = pl.cdiv(C, pack) * pack                   # VMEM sublane padding of C
    sample_vmem = c_sub * pl.cdiv(L, 128) * 128 * itemsize

    if sample_vmem <= target_tile_bytes:
        # small per-sample slab: keep the full (C, L) plane, tile over N
        tl = L
        tn = max(1, target_tile_bytes // sample_vmem)
        tn = min(tn, N)
        for steps in (4, 2):
            if N >= steps:
                tn = min(tn, max(1, N // steps))
                break
    else:
        # large spatial extent: tile the lane (spatial) axis in 128 multiples
        tn = 1
        col_bytes = c_sub * itemsize
        Lr = pl.cdiv(L, 128) * 128
        tl = max(128, (target_tile_bytes // col_bytes) // 128 * 128)
        tl = min(tl, Lr)
        need = -(-4 // max(N, 1))                     # ceil(4 / N) total steps
        if need > 1 and Lr >= need * 128:
            tl = min(tl, max(128, (Lr // need) // 128 * 128))

    grid = (pl.cdiv(N, tn), pl.cdiv(L, tl))
    tile_bytes = tn * c_sub * pl.cdiv(tl, 128) * 128 * itemsize
    kernel = functools.partial(_normalize_kernel, power=power, axis=1)

    return pl.pallas_call(
        kernel,
        out_shape=jax.ShapeDtypeStruct((N, C, L), x3.dtype),
        grid_spec=pltpu.PrefetchScalarGridSpec(
            num_scalar_prefetch=0,
            grid=grid,
            in_specs=[pl.BlockSpec((tn, C, tl), lambda n, l: (n, 0, l))],
            out_specs=pl.BlockSpec((tn, C, tl), lambda n, l: (n, 0, l)),
        ),
        compiler_params=pltpu.CompilerParams(
            dimension_semantics=("parallel", "parallel"),
            vmem_limit_bytes=_vmem_limit(tile_bytes),
        ),
        cost_estimate=pl.CostEstimate(
            flops=4 * N * C * L,
            transcendentals=N * L,
            bytes_accessed=2 * N * C * L * itemsize,
        ),
    )(x3)


def _normalize_2d_two_pass(x, power, pack, target_tile_bytes, c_chunk):
    """Huge C fallback: Pallas reduction over an 'arbitrary' C grid axis with an
    output-resident f32 accumulator, then one streaming broadcast-scale pass."""
    N, C = x.shape
    itemsize = jnp.dtype(x.dtype).itemsize
    tm = pack
    if c_chunk is None:
        tc = max(128, (target_tile_bytes // (tm * itemsize)) // 128 * 128)
    else:
        tc = max(128, (int(c_chunk) // 128) * 128)
    tc = min(tc, pl.cdiv(C, 128) * 128)

    grid = (pl.cdiv(N, tm), pl.cdiv(C, tc))           # reduction axis last
    tile_bytes = tm * tc * itemsize
    kernel = functools.partial(_rowsum_kernel, power=power, c_total=C, tc=tc)

    s = pl.pallas_call(
        kernel,
        out_shape=jax.ShapeDtypeStruct((N, 1), jnp.float32),
        grid_spec=pltpu.PrefetchScalarGridSpec(
            num_scalar_prefetch=0,
            grid=grid,
            in_specs=[pl.BlockSpec((tm, tc), lambda i, j: (i, j))],
            out_specs=pl.BlockSpec((tm, 1), lambda i, j: (i, 0)),
        ),
        compiler_params=pltpu.CompilerParams(
            dimension_semantics=("parallel", "arbitrary"),
            vmem_limit_bytes=_vmem_limit(tile_bytes),
        ),
        cost_estimate=pl.CostEstimate(
            flops=2 * N * C,
            transcendentals=0,
            bytes_accessed=N * C * itemsize,
        ),
    )(x)
    # second pass: pure elementwise broadcast scale (XLA streams it at roofline)
    return (x.astype(jnp.float32) * _inv_root(s, power)).astype(x.dtype)


# --------------------------------- API ----------------------------------------

def normalize(x, power=2, *, target_tile_bytes=_TARGET_TILE,
              force_two_pass=False, c_chunk=None):
    """Pallas TPU equivalent of Normalize(power).forward(x).

    out = x / x.pow(power).sum(dim=1, keepdim=True).pow(1/power), for any input
    of rank >= 2 ((N, C) embeddings, (N, C, H, W) activations, ...).
    Like the torch module there is no eps clamp: an all-zero reduction slice
    yields NaN (kept for exact semantic parity).
    """
    assert x.ndim >= 2, "need a channel axis at dim=1"
    assert float(power) > 0, "power must be > 0"
    orig_shape = x.shape
    dtype = x.dtype
    itemsize = jnp.dtype(dtype).itemsize
    pack = max(8, 32 // itemsize)                     # sublane packing (8/16/32)
    N, C = x.shape[0], x.shape[1]

    if x.ndim == 2:
        min_tile = pack * pl.cdiv(C, 128) * 128 * itemsize
        if force_two_pass or min_tile > _MIN_TILE_LIMIT:
            return _normalize_2d_two_pass(x, power, pack, target_tile_bytes, c_chunk)
        return _normalize_2d(x, power, pack, target_tile_bytes)

    # rank >= 3: collapse trailing spatial dims (free, contiguous) to (N, C, L)
    # and reduce over the channel/sublane axis inside the kernel.
    L = math.prod(x.shape[2:])
    x3 = x.reshape(N, C, L)
    min_block = pl.cdiv(C, pack) * pack * 128 * itemsize
    if min_block > _MIN_TILE_LIMIT:
        # TODO(synk): add a C-chunked two-pass Pallas path for rank>2 inputs
        # with extremely large channel counts; plain XLA fallback for now.
        xf = x3.astype(jnp.float32)
        s = jnp.sum(_pow_p(xf, power), axis=1, keepdims=True)
        return ((xf * _inv_root(s, power)).astype(dtype)).reshape(orig_shape)

    out3 = _normalize_3d(x3, power, pack, target_tile_bytes)
    return out3.reshape(orig_shape)


# --------------------------------- tests ---------------------------------------

if __name__ == "__main__":
    key = jax.random.PRNGKey(0)
    k1, k2, k3, k4 = jax.random.split(key, 4)

    # 1) conv-style (N, C, H, W): rank>2 path, channel reduction on the sublane
    #    axis, spatial dims collapsed onto lanes (no transpose, no padding copy).
    x4 = jax.random.normal(k1, (2, 4, 16, 16), dtype=jnp.float32)
    out4 = jax.block_until_ready(normalize(x4, power=2))
    norm4 = jnp.power(jnp.sum(jnp.power(x4, 2), axis=1, keepdims=True), 0.5)
    assert out4.shape == x4.shape and out4.dtype == x4.dtype
    assert jnp.max(jnp.abs(out4 - x4 / norm4)) < 1e-5

    # 2) embedding-style (N, C) with power=4 (integer-pow path, lane reduction).
    x2 = jax.random.normal(k2, (16, 32), dtype=jnp.float32)
    out2 = jax.block_until_ready(normalize(x2, power=4))
    norm2 = jnp.power(jnp.sum(jnp.power(x2, 4), axis=1, keepdims=True), 0.25)
    assert out2.shape == x2.shape and out2.dtype == x2.dtype
    assert jnp.max(jnp.abs(out2 - x2 / norm2)) < 1e-5

    # 3) ragged rows + non-128 C handled by Pallas edge blocks (no jnp.pad).
    x2b = jax.random.normal(k3, (37, 48), dtype=jnp.float32)
    out2b = jax.block_until_ready(normalize(x2b, power=2))
    norm2b = jnp.sqrt(jnp.sum(x2b * x2b, axis=1, keepdims=True))
    assert out2b.shape == x2b.shape
    assert jnp.max(jnp.abs(out2b - x2b / norm2b)) < 1e-5

    # 4) bf16 input on the conv path: f32 accumulate + single cast at the store.
    x4b = jax.random.normal(k4, (2, 4, 16, 16), dtype=jnp.bfloat16)
    out4b = jax.block_until_ready(normalize(x4b, power=2))
    x4f = x4b.astype(jnp.float32)
    ref4b = x4f / jnp.sqrt(jnp.sum(x4f * x4f, axis=1, keepdims=True))
    assert out4b.dtype == jnp.bfloat16
    assert jnp.max(jnp.abs(out4b.astype(jnp.float32) - ref4b)) < 2e-2

    # 5) force the large-C two-pass path on a small shape to validate the
    #    accumulator / lane-mask / edge-row handling.
    x2c = jax.random.normal(k1, (20, 300), dtype=jnp.float32)
    out2c = jax.block_until_ready(
        normalize(x2c, power=2, force_two_pass=True, c_chunk=128))
    norm2c = jnp.sqrt(jnp.sum(x2c * x2c, axis=1, keepdims=True))
    assert jnp.max(jnp.abs(out2c - x2c / norm2c)) < 1e-5

    print("KERNEL_OK")
</pallas_src>

<mosaic_0001>
module attributes {stable_mosaic.version = 11 : i64} {
  func.func @_normalize_kernel(%arg0: i32, %arg1: i32, %arg2: memref<1x4x256xf32, #tpu.memory_space<vmem>>, %arg3: memref<1x4x256xf32, #tpu.memory_space<vmem>>) attributes {dimension_semantics = [#tpu.dimension_semantics<parallel>, #tpu.dimension_semantics<parallel>], iteration_bounds = array<i64: 2, 1>, scalar_prefetch = 0 : i64, scratch_operands = 0 : i64, tpu.core_type = #tpu.core_type<tc>, window_params = [{transform_indices = @transform_0, window_bounds = array<i64: 1, 4, 256>}, {transform_indices = @transform_1, window_bounds = array<i64: 1, 4, 256>}]} {
    %c0 = arith.constant 0 : index
    %c0_0 = arith.constant 0 : index
    %c0_1 = arith.constant 0 : index
    %0 = vector.load %arg2[%c0, %c0_0, %c0_1] : memref<1x4x256xf32, #tpu.memory_space<vmem>>, vector<1x4x256xf32>
    %1 = arith.mulf %0, %0 : vector<1x4x256xf32>
    %cst = arith.constant dense<0.000000e+00> : vector<1x256xf32>
    %2 = vector.multi_reduction <add>, %1, %cst [1] : vector<1x4x256xf32> to vector<1x256xf32>
    %3 = vector.shape_cast %2 : vector<1x256xf32> to vector<1x1x256xf32>
    %4 = math.rsqrt %3 : vector<1x1x256xf32>
    %5 = vector.broadcast %4 : vector<1x1x256xf32> to vector<1x4x256xf32>
    %6 = arith.mulf %0, %5 : vector<1x4x256xf32>
    %c0_2 = arith.constant 0 : index
    %c0_3 = arith.constant 0 : index
    %c0_4 = arith.constant 0 : index
    %7 = vector.load %arg3[%c0_2, %c0_3, %c0_4] : memref<1x4x256xf32, #tpu.memory_space<vmem>>, vector<1x4x256xf32>
    tpu.vector_store %arg3[%c0_2, %c0_3, %c0_4], %6 {strides = array<i32>} : memref<1x4x256xf32, #tpu.memory_space<vmem>>, vector<1x4x256xf32>,
    return
  }
  func.func @transform_0(%arg0: i32, %arg1: i32) -> (i32, i32, i32) {
    %c0_i32 = arith.constant 0 : i32
    %c0_i32_0 = arith.constant 0 : i32
    return %arg0, %c0_i32, %arg1 : i32, i32, i32
  }
  func.func @transform_1(%arg0: i32, %arg1: i32) -> (i32, i32, i32) {
    %c0_i32 = arith.constant 0 : i32
    %c0_i32_0 = arith.constant 0 : i32
    return %arg0, %c0_i32, %arg1 : i32, i32, i32
  }
}

</mosaic_0001>

<bundles_post_ra>
// kernel: tpu_custom_call.1
= control target key start
LH: loop header
LB: loop body
LE: loop exit
PB: predicated region body
PF: predicated region fallthrough
CT: control target
= control target key end

     0   :  { %6 = vsyncpa [#allocation3], 0  ;;  %s621_s0 = inlined_call_operand.hbm [shape: f32[2,4,256], index: 0, kind: input, shape index: {}]   ;;  %s622_s1 = inlined_call_operand.hbm [shape: f32[2,4,256], index: 1, kind: output, shape index: {}]  }
   0x1   :  { %8 = vsyncpa [#allocation3 + $0x1], 0 }
   0x2   :  { %9 = vsyncpa [#allocation4], 0 }
   0x3   :  { %11 = vsyncpa [#allocation4 + $0x1], 0  ;;  %s487_s6 = smov 0   ;;  %s489_s7 = smov 0  }
   0x4   :  { %s491_s8 = smov 0   ;;  %s493_s9 = smov 0  }
   0x5   :  { %s495_s10 = smov 0   ;;  %s497_s11 = smov 0  }
   0x6 LB: > { %s282_s12 = sadd.s32 4294967295, %s473_s11   ;;  %s283_s13 = sadd.s32 4294967294, %s473_s11   ;;  %s473_s11 = sphi %s497_s11, %s17_s11   ;;  %s469_s10 = sphi %s495_s10, %s634_s10   ;;  %s465_s9 = sphi %s493_s9, %s633_s9   ;;  %s461_s8 = sphi %s491_s8, %s632_s8   ;;  %s457_s7 = sphi %s489_s7, %s631_s7   ;;  %s453_s6 = sphi %s487_s6, %s630_s6  }
   0x7   : > { %s29_s14 = sadd.s32 1, %s469_s10  ;;  %s38_s15 = sadd.s32 1, %s461_s8 }
   0x8   : > { %p31_p0 = scmp.ge.s32.totalorder %s29_s14, 2  ;;  %p45_p1 = scmp.ne.s32.totalorder %s461_s8, %s457_s7 }
   0x9   : > { %p46_p2 = scmp.eq.s32.totalorder %s473_s11, 0  ;;  %p51_p3 = scmp.ne.s32.totalorder %s457_s7, %s453_s6 }
   0xa   : > { %s636_s14 = smov (%p31_p0, %s29_s14), 0  ;;  %p52_p5 = scmp.eq.s32.totalorder %s282_s12, 0 }
   0xb   : > { %p528_p4 = por %p46_p2, %p45_p1  ;;  %s33_s17 = ssub.s32 %s469_s10, %s636_s14 }
   0xc   : > { %p77_p6 = scmp.eq.s32.totalorder %s282_s12, 1  ;;  %p36_p7 = scmp.eq.s32.totalorder %s33_s17, 0 }
   0xd   : > { %p534_p8 = por %p52_p5, %p51_p3  ;;  %p83_p10 = scmp.eq.s32.totalorder %s283_s13, 1 }
   0xe   : > { %p538_p9 = por %p77_p6, %p45_p1  ;;  %p311_p13 = scmp.lt.s32.totalorder %s473_s11, 2 }
   0xf   : > { %s543_s20 = scalar_select %p36_p7, %s461_s8, %s38_s15  }
  0x10   : > { %p545_p11 = por %p83_p10, %p51_p3  ;;  %s103_s22 = sand.u32 1, %s461_s8  }
  0x11   : > { %s286_s23 = sshll.u32 %s103_s22, 3  ;;  %s297_s24 = sshll.u32 %s469_s10, 7 }
  0x12   : > { %s626_s21 = scalar_select %p545_p11, 1, 0 }
  0x13   : > { %s115_s27 = scalar_lea.hbm %s621_s0, %s297_s24  ;;  %s107_s28 = scalar_lea.vmem [#allocation2], %s286_s23 }
  0x14   : > { %s117_s29 = sshll.u32 %s107_s28, 4  ;;  %p558_p0 = pnand %p311_p13, %p528_p4  ;;  %s118_s29 = int_to_ptr.vmem [resolvable:$true] %s117_s29 }
  0x15   : > { %p289_p1 = scmp.ge.s32.totalorder %s473_s11, 1  ;;  %p122_p2 = scmp.lt.s32.totalorder %s473_s11, 3 }
  0x16   : > { %s104_s2 = scalar_lea.sflag [#allocation3], %s103_s22  ;;  %p367_p3 = pneg %p558_p0 }
  0x17   : > { %s378_s3 = scalar_lea.vmem %s118_s29, 128  ;;  %s475_s4 = smov [#allocation2]  }
  0x18   : > { %p379_p5 = scmp.ne.s32.totalorder %s118_s29, %s378_s3  ;;  %s383_s5 = sshll.u32 %s475_s4, 4  ;;  %s384_s5 = int_to_ptr.vmem [resolvable:$false] %s383_s5 }
  0x19   : > { %s385_s12 = scalar_lea.vmem %s384_s5, 256  ;;  %p386_p10 = scmp.lt.s32.totalorder %s118_s29, %s384_s5 }
  0x1a   : > { %p381_p6 = pnand %p379_p5, %p367_p3  ;;  %p387_p12 = scmp.lt.s32.totalorder %s385_s12, %s378_s3 }
  0x1c   : > { %p382_p7 = pneg %p381_p6  ;;  %p388_p4 = por %p387_p12, %p386_p10 }
  0x1e   : > { %p389_p13 = pnand %p388_p4, %p382_p7 }
  0x20   : > { %392 = shalt.err (!%p389_p13)
}
  0x21   : > { %306 = dma.hbm_to_vmem [thread:$0]  (!%p558_p0), %s115_s27, 128, %s118_s29, %s104_s2  }
  0x22   : > { %p123_p11 = pnand %p289_p1, %p122_p2 }
  0x23   : > { %s573_s13 = sand.u32 (!%p123_p11), 1, %s457_s7  }
  0x24   : > { %126 = sbr.rel (%p123_p11) target bundleno = 91 (0x5b), region = 24  ;;  %s290_s15 = sshll.u32 (!%p123_p11), %s573_s13, 3 }
  0x25   : > { %s129_s16 = scalar_lea.sflag (!%p123_p11), [#allocation3], %s573_s13  ;;  %s132_s17 = scalar_lea.vmem (!%p123_p11), [#allocation2], %s290_s15 }
  0x29   : > { %444 = dma.done.wait (%p534_p8), %s129_s16, 128  }
  0x2a   : > { %446 = vsyncadd (%p534_p8), %s129_s16, 4294967168  ;;  %v153_v0 = vld [vmem:[%s132_s17] sm:$0xff]  ;;  %vm158_vm0 = vcmask 1043456   ;;  %s150_s18 = scalar_lea.vmem [#allocation5], %s290_s15  ;;  %s298_s23 = sshll.u32 %s465_s9, 7 }
  0x2b   : > { %v154_v1 = vmul.f32 %v153_v0, %v153_v0  ;;  %s198_s22 = sshll.u32 %s150_s18, 4  ;;  %s196_s26 = scalar_lea.hbm %s622_s1, %s298_s23  ;;  %s199_s22 = int_to_ptr.vmem [resolvable:$true] %s198_s22 }
  0x2c   : > { %s182_s27 = scalar_lea.sflag [#allocation4], %s573_s13  ;;  %s393_s28 = scalar_lea.vmem %s199_s22, 128 }
  0x2d   : > { %v156_v2 = vcombine.high %v154_v1, %v154_v1  ;;  %v159_v3 = vsel %vm158_vm0, %v154_v1, 0.0  ;;  %p394_p8 = scmp.ne.s32.totalorder %s199_s22, %s393_s28  ;;  %s476_s29 = smov [#allocation5]  }
  0x2e   : > { %v160_v4 = vrot.slane %v159_v3, 4  ;;  %s397_s30 = sshll.u32 %s476_s29, 4  ;;  %s398_s30 = int_to_ptr.vmem [resolvable:$false] %s397_s30 }
  0x2f   : > { %v166_v5 = vsel %vm158_vm0, %v156_v2, 0.0  ;;  %p395_p11 = pnand %p394_p8, %p538_p9  ;;  %s399_s2 = scalar_lea.vmem %s398_s30, 256 }
  0x30   : > { %v161_v6 = vadd.f32 %v160_v4, %v159_v3  ;;  %v167_v7 = vrot.slane %v166_v5, 4  ;;  %p400_p0 = scmp.lt.s32.totalorder %s199_s22, %s398_s30  ;;  %p401_p1 = scmp.lt.s32.totalorder %s399_s2, %s393_s28 }
  0x31   : > { %p396_p12 = pneg %p395_p11 }
  0x32   : > { %v162_v8 = vrot.slane %v161_v6, 2  ;;  %v168_v9 = vadd.f32 %v167_v7, %v166_v5  ;;  %p402_p2 = por %p401_p1, %p400_p0 }
  0x34   : > { %v163_v10 = vadd.f32 %v162_v8, %v161_v6  ;;  %v169_v11 = vrot.slane %v168_v9, 2  ;;  %p403_p3 = pnand %p402_p2, %p396_p12 }
  0x36   : > { %v164_v12 = vrot.slane %v163_v10, 1  ;;  %v170_v13 = vadd.f32 %v169_v11, %v168_v9 }
  0x38   : > { %v165_v14 = vadd.f32 %v164_v12, %v163_v10  ;;  %v171_v15 = vrot.slane %v170_v13, 1 }
  0x3a   : > { %v172_v16 = vadd.f32 %v171_v15, %v170_v13  ;;  %361 = vrsqrt.f32 %v165_v14 }
  0x3c   : > { %363 = vrsqrt.f32 %v172_v16 }
  0x47   : > { %v362_v17 = vpop.eup %361 }
  0x49   : > { %v364_v18 = vpop.eup %363 }
  0x4a   : > { %v177_v19 = vcombine.low %v362_v17, %v364_v18 }
  0x4c   : > { %v179_v20 = vmul.f32 %v177_v19, %v153_v0 }
  0x4e   : > { %180 = vst [vmem:[%s150_s18] sm:$0xff] %v179_v20 }
  0x4f   : > { %406 = shalt.err (!%p403_p3)
}
  0x50   : > { %s407_s9 = scalar_lea.hbm %s196_s26, 128  ;;  %s411_s5 = scalar_lea.hbm %s622_s1, 256 }
  0x51   : > { %p408_p5 = scmp.ne.s32.totalorder %s196_s26, %s407_s9  ;;  %p412_p10 = scmp.lt.s32.totalorder %s196_s26, %s622_s1 }
  0x52   : > { %p413_p4 = scmp.lt.s32.totalorder %s411_s5, %s407_s9 }
  0x53   : > { %p409_p6 = pnand %p408_p5, %p538_p9 }
  0x54   : > { %p414_p13 = por %p413_p4, %p412_p10 }
  0x55   : > { %p410_p7 = pneg %p409_p6 }
  0x57   : > { %p415_p8 = pnand %p414_p13, %p410_p7 }
  0x59   : > { %418 = shalt.err (!%p415_p8)
}
  0x5a   : > { %301 = dma.vmem_to_hbm [thread:$0]  (%p538_p9), %s199_s22, 128, %s196_s26, %s182_s27  }
  0x5b PF: > { %s210_s15 = sand.u32 1, %s453_s6   ;;  %p628_p11 = scmp.ne.s32.totalorder %s626_s21, 0 }
  0x5c   : > { %p629_p12 = scmp.ge.s32.totalorder %s473_s11, 2  ;;  %s211_s16 = scalar_lea.sflag [#allocation4], %s210_s15 }
  0x5e   : > { %p308_p0 = pnand %p629_p12, %p628_p11 }
  0x60   : > { %p309_p1 = pneg %p308_p0 }
  0x62   : > { %448 = dma.done.wait (%p309_p1), %s211_s16, 128  }
  0x63   : > { %450 = vsyncadd (%p309_p1), %s211_s16, 4294967168  ;;  %s17_s11 = sadd.s32 1, %s473_s11   ;;  %s630_s6 = smov %s457_s7 }
  0x64   : > { %p14_p2 = scmp.ge.s32.totalorder %s17_s11, 4   ;;  %s631_s7 = smov %s461_s8 }
  0x65   : > { %s632_s8 = smov %s543_s20  ;;  %s633_s9 = smov %s469_s10 }
  0x66   : > { %s634_s10 = smov %s636_s14  ;;  %16 = sbr.rel (!%p14_p2) target bundleno = 6 (0x6), region = 69 }
  0x6b   :  { %216 = vsyncpa [#allocation3], 1 }
  0x6c   :  { %218 = vsyncpa [#allocation3 + $0x1], 1 }
  0x6d   :  { %219 = vsyncpa [#allocation4], 1 }
  0x6e   :  { %221 = vsyncpa [#allocation4 + $0x1], 1 }

</bundles_post_ra>
